<compile_context>
chip_gen: v7x
topology: tpu7x:2x2x1
jax: 0.10.0
libtpu: 0.0.40
codegen_flags: <defaults>
</compile_context>

<pallas_src>
import functools

import jax
import jax.numpy as jnp
from jax.experimental import pallas as pl
from jax.experimental.pallas import tpu as pltpu


_LANE = 128
_GATHER_MIN_C = 32768     # below this, streaming full rows wins on HBM BW
_GATHER_ROWS = 128        # rows handled per grid step in the gather path


def _round_up(x, m):
    return (x + m - 1) // m * m


def _sublane_pack(dtype):
    itemsize = jnp.dtype(dtype).itemsize
    return {4: 8, 2: 16, 1: 32}.get(itemsize, 8)


def _tpu_vmem_bytes():
    try:
        return int(getattr(pltpu.get_tpu_info(), "vmem_capacity_bytes",
                           64 * 1024 * 1024))
    except Exception:
        return 64 * 1024 * 1024


# ---------------------------------------------------------------------------
# Streaming path: small/medium class dim -> stream (tb, C) tiles of logits.
# ---------------------------------------------------------------------------
def _stream_kernel(logits_ref, labels_ref, partial_ref, *, sign, b):
    tb, c = logits_ref.shape
    row0 = pl.program_id(0) * tb
    logits = logits_ref[...]                             # (tb, c), native dtype
    labels = labels_ref[...]                             # (tb, 1) int32

    class_ids = jax.lax.broadcasted_iota(jnp.int32, (tb, c), 1)
    mask = class_ids == labels                           # one-hot of the gather
    # Select + lane-reduce in the native dtype (exact: <=1 non-zero per row).
    picked = jnp.where(mask, logits, jnp.zeros((), logits.dtype))
    row_sums = jnp.sum(picked, axis=1, keepdims=True).astype(jnp.float32)

    # Mask rows past the real batch (partial last block: garbage data/labels).
    row_ids = jax.lax.broadcasted_iota(jnp.int32, (tb, 1), 0) + row0
    row_sums = jnp.where(row_ids < b, row_sums, 0.0)
    partial_ref[0, 0] = sign * jnp.sum(row_sums)


def _logit_loss_stream(logits, labels, sign):
    b, c = logits.shape
    dtype = logits.dtype
    itemsize = jnp.dtype(dtype).itemsize
    pack = _sublane_pack(dtype)

    phys = _tpu_vmem_bytes()
    vmem_limit = min(phys // 2, 64 * 1024 * 1024)
    # ~2-4 MiB logits blocks hit the HBM roofline; smaller on v7x (64 MiB VMEM).
    target_bytes = 4 * 1024 * 1024 if phys >= 100 * 1024 * 1024 else 2 * 1024 * 1024

    row_bytes = max(c * itemsize, 1)
    tb = max(pack, (target_bytes // row_bytes) // pack * pack)
    if b > pack:
        # keep >= 2 grid steps so ("parallel",) can use both v7x TensorCores
        tb = min(tb, _round_up((b + 1) // 2, pack))
    tb = min(tb, _round_up(b, pack))
    tb = max(tb, pack)

    # Only a tiny (< one packed block) pad is ever materialized; large ragged
    # batches use a partial last block + in-kernel row mask instead of jnp.pad.
    if tb > b:
        logits = jnp.pad(logits, ((0, tb - b), (0, 0)))
        labels = jnp.pad(labels, ((0, tb - b),))
    labels2d = labels.reshape(-1, 1)
    n_tiles = pl.cdiv(logits.shape[0], tb)

    kernel = functools.partial(_stream_kernel, sign=sign, b=b)
    partials = pl.pallas_call(
        kernel,
        out_shape=jax.ShapeDtypeStruct((n_tiles, 1), jnp.float32),
        grid_spec=pltpu.PrefetchScalarGridSpec(
            num_scalar_prefetch=0,
            grid=(n_tiles,),
            in_specs=[
                pl.BlockSpec((tb, c), lambda i: (i, 0)),
                pl.BlockSpec((tb, 1), lambda i: (i, 0)),
            ],
            out_specs=pl.BlockSpec((1, 1), lambda i: (i, 0),
                                   memory_space=pltpu.SMEM),
        ),
        compiler_params=pltpu.CompilerParams(
            dimension_semantics=("parallel",),
            vmem_limit_bytes=vmem_limit,
        ),
        cost_estimate=pl.CostEstimate(
            flops=2 * b * c,
            transcendentals=0,
            bytes_accessed=b * c * itemsize + b * 4 + n_tiles * 4,
        ),
    )(logits, labels2d)
    return jnp.sum(partials)


# ---------------------------------------------------------------------------
# Gather path: huge class dim -> per-row 128-lane slab DMAs straight from HBM.
# ---------------------------------------------------------------------------
def _gather_kernel(labels_smem, labels_ref, logits_hbm, partial_ref,
                   buf, sems, *, sign, b, c, rows):
    row0 = pl.program_id(0) * rows
    n_valid = jnp.minimum(rows, b - row0)

    # Issue all DMAs for this step first (addresses read from SMEM)...
    @pl.loop(0, n_valid)
    def _issue(r):
        row = row0 + r
        lab = labels_smem[row]
        col0 = jnp.clip((lab // _LANE) * _LANE, 0, c - _LANE)  # clamp: never OOB
        pltpu.make_async_copy(
            logits_hbm.at[pl.ds(row, 1), pl.ds(col0, _LANE)],
            buf.at[pl.ds(r, 1), :],
            sems.at[r],
        ).start()

    # ...then wait. Static src address: .wait() only needs the semaphore and
    # transfer size, so no SMEM label reads are interleaved with the waits.
    @pl.loop(0, n_valid)
    def _wait(r):
        pltpu.make_async_copy(
            logits_hbm.at[pl.ds(0, 1), pl.ds(0, _LANE)],
            buf.at[pl.ds(r, 1), :],
            sems.at[r],
        ).wait()

    labs = labels_ref[...]                                     # (rows, 1) int32
    col0 = jnp.clip((labs // _LANE) * _LANE, 0, c - _LANE)
    target = labs - col0                                       # lane within slab
    lane = jax.lax.broadcasted_iota(jnp.int32, (rows, _LANE), 1)
    mask = lane == target
    picked = jnp.where(mask, buf[...], jnp.zeros((), buf.dtype))
    row_sums = jnp.sum(picked, axis=1, keepdims=True).astype(jnp.float32)

    row_ids = jax.lax.broadcasted_iota(jnp.int32, (rows, 1), 0) + row0
    row_sums = jnp.where(row_ids < b, row_sums, 0.0)           # stale/garbage rows
    partial_ref[0, 0] = sign * jnp.sum(row_sums)


def _logit_loss_gather(logits, labels, sign):
    b, c = logits.shape
    rows = _GATHER_ROWS
    itemsize = jnp.dtype(logits.dtype).itemsize

    b_pad = _round_up(b, rows)
    labels_pad = jnp.pad(labels, ((0, b_pad - b),)) if b_pad != b else labels
    labels2d = labels_pad.reshape(-1, 1)                       # tiny (b_pad, 1)
    n_tiles = b_pad // rows

    phys = _tpu_vmem_bytes()
    vmem_limit = min(phys // 2, 64 * 1024 * 1024)

    kernel = functools.partial(_gather_kernel, sign=sign, b=b, c=c, rows=rows)
    partials = pl.pallas_call(
        kernel,
        out_shape=jax.ShapeDtypeStruct((n_tiles, 1), jnp.float32),
        grid_spec=pltpu.PrefetchScalarGridSpec(
            num_scalar_prefetch=1,                       # labels -> SMEM (DMA addrs)
            grid=(n_tiles,),
            in_specs=[
                pl.BlockSpec((rows, 1), lambda i, lab: (i, 0)),
                pl.BlockSpec(memory_space=pl.ANY),       # logits stay in HBM
            ],
            out_specs=pl.BlockSpec((1, 1), lambda i, lab: (i, 0),
                                   memory_space=pltpu.SMEM),
            scratch_shapes=[
                pltpu.VMEM((rows, _LANE), logits.dtype),
                pltpu.SemaphoreType.DMA((rows,)),
            ],
        ),
        compiler_params=pltpu.CompilerParams(
            dimension_semantics=("parallel",),
            vmem_limit_bytes=vmem_limit,
        ),
        cost_estimate=pl.CostEstimate(
            flops=4 * b * _LANE,
            transcendentals=0,
            bytes_accessed=b * _LANE * itemsize + 2 * b_pad * 4 + n_tiles * 4,
        ),
    )(labels_pad, labels2d, logits)
    return jnp.sum(partials)


# ---------------------------------------------------------------------------
# Public wrapper (LogitLoss.forward).
# ---------------------------------------------------------------------------
def logit_loss(logits, labels, targeted=True):
    """Pallas implementation of LogitLoss.forward.

    logits: (B, C) float (read in its native dtype)
    labels: (B,)   integer
    returns scalar float32
    """
    b, c = logits.shape
    sign = 1.0 if targeted else -1.0
    labels = labels.reshape(-1).astype(jnp.int32)
    # NOTE: out-of-range labels silently contribute 0 (torch.gather would raise).
    if c >= _GATHER_MIN_C and c >= _LANE:
        return _logit_loss_gather(logits, labels, sign)
    return _logit_loss_stream(logits, labels, sign)


if __name__ == "__main__":
    key = jax.random.PRNGKey(0)
    k1, k2, k3, k4, k5, k6 = jax.random.split(key, 6)

    # 1) Small class dim, f32 -> streaming path.
    batch, num_classes = 8, 32
    logits = jax.random.normal(k1, (batch, num_classes), dtype=jnp.float32)
    labels = jax.random.randint(k2, (batch,), 0, num_classes, dtype=jnp.int32)

    loss = logit_loss(logits, labels, targeted=True)
    jax.block_until_ready(loss)
    ref = jnp.sum(jnp.take_along_axis(logits, labels[:, None], axis=1))
    assert jnp.allclose(loss, ref, atol=1e-5), (loss, ref)

    loss_u = logit_loss(logits, labels, targeted=False)
    jax.block_until_ready(loss_u)
    assert jnp.allclose(loss_u, -ref, atol=1e-5), (loss_u, -ref)

    # 2) Ragged batch, bf16, mid-size class dim -> streaming path (masked rows).
    batch2, num_classes2 = 13, 1024
    logits2 = jax.random.normal(k3, (batch2, num_classes2), dtype=jnp.bfloat16)
    labels2 = jax.random.randint(k4, (batch2,), 0, num_classes2, dtype=jnp.int32)
    loss2 = logit_loss(logits2, labels2, targeted=True)
    jax.block_until_ready(loss2)
    ref2 = jnp.sum(
        jnp.take_along_axis(logits2, labels2[:, None], axis=1).astype(jnp.float32))
    assert jnp.allclose(loss2, ref2, atol=1e-2, rtol=1e-2), (loss2, ref2)

    # 3) Huge class dim, bf16 -> manual-DMA slab-gather path.
    batch3, num_classes3 = 5, _GATHER_MIN_C
    logits3 = jax.random.normal(k5, (batch3, num_classes3), dtype=jnp.bfloat16)
    labels3 = jax.random.randint(k6, (batch3,), 0, num_classes3, dtype=jnp.int32)
    loss3 = logit_loss(logits3, labels3, targeted=True)
    jax.block_until_ready(loss3)
    ref3 = jnp.sum(
        jnp.take_along_axis(logits3, labels3[:, None], axis=1).astype(jnp.float32))
    assert jnp.allclose(loss3, ref3, atol=1e-2, rtol=1e-2), (loss3, ref3)

    print("KERNEL_OK")
</pallas_src>

<mosaic_0001>
module attributes {stable_mosaic.version = 11 : i64} {
  func.func @_stream_kernel(%arg0: i32, %arg1: memref<8x32xf32, #tpu.memory_space<vmem>>, %arg2: memref<8x1xi32, #tpu.memory_space<vmem>>, %arg3: memref<1x1xf32, #tpu.memory_space<smem>>) attributes {dimension_semantics = [#tpu.dimension_semantics<parallel>], iteration_bounds = array<i64: 1>, scalar_prefetch = 0 : i64, scratch_operands = 0 : i64, tpu.core_type = #tpu.core_type<tc>, window_params = [{transform_indices = @transform_0, window_bounds = array<i64: 8, 32>}, {transform_indices = @transform_1, window_bounds = array<i64: 8, 1>}, {transform_indices = @transform_2, window_bounds = array<i64: 1, 1>}]} {
    %c8_i32 = arith.constant 8 : i32
    %0 = arith.muli %arg0, %c8_i32 : i32
    %c0 = arith.constant 0 : index
    %c0_0 = arith.constant 0 : index
    %1 = vector.load %arg1[%c0, %c0_0] : memref<8x32xf32, #tpu.memory_space<vmem>>, vector<8x32xf32>
    %c0_1 = arith.constant 0 : index
    %c0_2 = arith.constant 0 : index
    %2 = vector.load %arg2[%c0_1, %c0_2] : memref<8x1xi32, #tpu.memory_space<vmem>>, vector<8x1xi32>
    %3 = tpu.iota {dimensions = array<i32: 1>} : vector<8x32xi32>
    %4 = vector.broadcast %2 : vector<8x1xi32> to vector<8x32xi32>
    %5 = arith.cmpi eq, %3, %4 : vector<8x32xi32>
    %cst = arith.constant 0.000000e+00 : f32
    %6 = vector.broadcast %cst : f32 to vector<8x32xf32>
    %7 = arith.select %5, %1, %6 : vector<8x32xi1>, vector<8x32xf32>
    %cst_3 = arith.constant dense<0.000000e+00> : vector<8xf32>
    %8 = vector.multi_reduction <add>, %7, %cst_3 [1] : vector<8x32xf32> to vector<8xf32>
    %9 = vector.shape_cast %8 : vector<8xf32> to vector<8x1xf32>
    %10 = tpu.iota {dimensions = array<i32: 0>} : vector<8x1xi32>
    %11 = vector.broadcast %0 : i32 to vector<8x1xi32>
    %12 = arith.addi %10, %11 : vector<8x1xi32>
    %c8_i32_4 = arith.constant 8 : i32
    %13 = vector.broadcast %c8_i32_4 : i32 to vector<8x1xi32>
    %14 = arith.cmpi slt, %12, %13 : vector<8x1xi32>
    %cst_5 = arith.constant 0.000000e+00 : f32
    %15 = vector.broadcast %cst_5 : f32 to vector<8x1xf32>
    %16 = arith.select %14, %9, %15 : vector<8x1xi1>, vector<8x1xf32>
    %17 = vector.shape_cast %16 : vector<8x1xf32> to vector<1x8x1xf32>
    %cst_6 = arith.constant dense<0.000000e+00> : vector<1xf32>
    %18 = vector.multi_reduction <add>, %17, %cst_6 [1, 2] : vector<1x8x1xf32> to vector<1xf32>
    %19 = vector.shape_cast %18 : vector<1xf32> to vector<1x1x1xf32>
    %20 = vector.extract %19[0, 0, 0] : f32 from vector<1x1x1xf32>
    %cst_7 = arith.constant 1.000000e+00 : f32
    %21 = arith.mulf %cst_7, %20 : f32
    %c0_8 = arith.constant 0 : index
    %c0_9 = arith.constant 0 : index
    %22 = memref.load %arg3[%c0_8, %c0_9] : memref<1x1xf32, #tpu.memory_space<smem>>
    memref.store %21, %arg3[%c0_8, %c0_9] : memref<1x1xf32, #tpu.memory_space<smem>>
    return
  }
  func.func @transform_0(%arg0: i32) -> (i32, i32) {
    %c0_i32 = arith.constant 0 : i32
    %c0_i32_0 = arith.constant 0 : i32
    return %arg0, %c0_i32 : i32, i32
  }
  func.func @transform_1(%arg0: i32) -> (i32, i32) {
    %c0_i32 = arith.constant 0 : i32
    %c0_i32_0 = arith.constant 0 : i32
    return %arg0, %c0_i32 : i32, i32
  }
  func.func @transform_2(%arg0: i32) -> (i32, i32) {
    %c0_i32 = arith.constant 0 : i32
    %c0_i32_0 = arith.constant 0 : i32
    return %arg0, %c0_i32 : i32, i32
  }
}

</mosaic_0001>

<bundles_post_ra>
// kernel: tpu_custom_call.1
= control target key start
LH: loop header
LB: loop body
LE: loop exit
PB: predicated region body
PF: predicated region fallthrough
CT: control target
= control target key end

     0   :  { %s110_s0 = inlined_call_operand.vmem [shape: f32[8,32], index: 0, kind: input, shape index: {}]   ;;  %s111_s1 = inlined_call_operand.vmem [shape: s32[8,1], index: 1, kind: input, shape index: {}]   ;;  %s112_s2 = inlined_call_operand.hbm [shape: f32[1,1], index: 2, kind: output, shape index: {}]  }
   0x1   :  { %v14_v0 = vld [vmem:[%s111_s1] sm:$0xff] }
   0x2   :  { %7 = vsyncpa [#allocation3], 0  ;;  %v75_v1 = vmov 0   ;;  %v15_v2 = vlaneseq  ;;  %v13_v4 = vld [vmem:[%s110_s0] sm:$0xff]  ;;  %vm22_vm0 = vcmask 261120   ;;  %vm32_vm2 = vcmask 7168  }
   0x3   :  { %62 = vset.pattern.permute.xlu0 %v75_v1  ;;  %s63_s14 = scalar_lea.hbm %s112_s2, 16 }
   0x4   :  { %18 = vperm.xlu0 %62, %v14_v0   ;;  %v16_v3 = vand.u32 127, %v15_v2  ;;  %p64_p0 = scmp.ne.s32.totalorder %s112_s2, %s63_s14  ;;  %p67_p1 = scmp.lt.u32.totalorder %s63_s14, %s112_s2 }
   0x6   :  { %p69_p2 = pnand %p67_p1, %p64_p0 }
  0x83   :  { %v19_v5 = vpop.permute.xlu0 %18 }
  0x84   :  { %vm20_vm1 = vcmp.eq.s32.totalorder %v16_v3, %v19_v5 }
  0x85   :  { %v21_v6 = vsel %vm20_vm1, %v13_v4, 0.0 }
  0x86   :  { %v23_v7 = vsel %vm22_vm0, %v21_v6, 0.0 }
  0x87   :  { %24 = vadd.xlane.f32.xlu0 %v23_v7 }
 0x114   :  { %v25_v8 = vpop.xlane.xlu0 %24 }
 0x115   :  { %v33_v9 = vsel %vm32_vm2, %v25_v8, 0.0 }
 0x116   :  { %34 = vadd.xlane.f32.xlu1 %v33_v9 }
 0x1a3   :  { %v35_v10 = vpop.xlane.xlu1 %34 }
 0x1a4   :  { %v36_v11 = vrot.slane %v35_v10, 4 }
 0x1a6   :  { %v37_v12 = vadd.f32 %v36_v11, %v35_v10 }
 0x1a8   :  { %v38_v13 = vrot.slane %v37_v12, 2 }
 0x1aa   :  { %v39_v14 = vadd.f32 %v38_v13, %v37_v12 }
 0x1ac   :  { %v40_v15 = vrot.slane %v39_v14, 1 }
 0x1ae   :  { %v41_v16 = vadd.f32 %v40_v15, %v39_v14 }
 0x1b0   :  { %58 = vpush %v41_v16 }
 0x1e1   :  { %s59_s1 = spop %58 }
 0x1e2   :  { %44 = sst [smem:[#allocation2]] %s59_s1 }
 0x1e3   :  { %72 = shalt.err (!%p69_p2)
}
 0x1e4   :  { %s76_s19 = smov [#allocation2]  }
 0x1e5   :  { %52 = dma.smem_to_hbm %s76_s19, 16, %s112_s2, [#allocation3]  }
 0x1e6   :  { %73 = dma.done.wait [#allocation3], 16  }
 0x1e7   :  { %74 = vsyncadd [#allocation3], 4294967280 }
 0x1e8   :  { %56 = sfence }
 0x1e9   :  { %57 = vsyncpa [#allocation3], 1 }

</bundles_post_ra>
